<compile_context>
chip_gen: v5e
topology: v5e:2x2
jax: 0.10.0
libtpu: 0.0.40
codegen_flags: <defaults>
</compile_context>

<pallas_src>
import jax
import jax.numpy as jnp
from jax import lax
from jax.experimental import pallas as pl
from jax.experimental.pallas import tpu as pltpu


# ---------------------------------------------------------------------------
# Pallas kernel: one GRU layer, T_BLK time steps per grid invocation,
# hidden state carried in VMEM scratch across time blocks.
# ---------------------------------------------------------------------------
def _gru_layer_kernel(gi_ref, h0_ref, whh_ref, bhn_ref, out_ref, hT_ref, h_scr):
    # gi_ref:  (T_BLK, B, 3H)  precomputed input projection (+ combined r/z biases)
    # h0_ref:  (B, H)          initial hidden for this batch tile (resident)
    # whh_ref: (3H, H)         [W_hr; W_hz; W_hn] in PyTorch (out, in) layout (resident)
    # bhn_ref: (1, H)          hidden bias of the n gate (must stay inside r*(...))
    # out_ref: (T_BLK, B, H)   outputs for this time block
    # hT_ref:  (B, H)          final hidden (resident accumulator, written on last block)
    # h_scr:   (B, H) f32      carried hidden state
    t_blk = pl.program_id(1)
    n_tblk = pl.num_programs(1)
    T_BLK = gi_ref.shape[0]
    B, H = h0_ref.shape

    @pl.when(t_blk == 0)
    def _():
        h_scr[...] = h0_ref[...].astype(jnp.float32)

    whh = whh_ref[...]                                              # (3H, H), resident
    # Hoist the bias broadcast out of the time loop (JAX does not CSE broadcasts).
    bhn = jnp.broadcast_to(bhn_ref[...].astype(jnp.float32), (B, H))

    def step(i, h):
        gi = gi_ref[i].astype(jnp.float32)                          # (B, 3H)
        # Single fused hidden-side matmul: contract last dims of (B,H) and (3H,H)
        # -> (B, 3H); no weight transpose, f32 accumulate on the MXU.
        gh = lax.dot_general(
            h.astype(whh.dtype), whh,
            dimension_numbers=(((1,), (1,)), ((), ())),
            preferred_element_type=jnp.float32,
        )
        r = jax.nn.sigmoid(gi[:, :H] + gh[:, :H])
        z = jax.nn.sigmoid(gi[:, H:2 * H] + gh[:, H:2 * H])
        n = jnp.tanh(gi[:, 2 * H:] + r * (gh[:, 2 * H:] + bhn))
        h_new = (1.0 - z) * n + z * h                               # (B, H) f32
        out_ref[i] = h_new.astype(out_ref.dtype)
        return h_new

    h = lax.fori_loop(0, T_BLK, step, h_scr[...], unroll=True)
    h_scr[...] = h

    @pl.when(t_blk == n_tblk - 1)
    def _():
        hT_ref[...] = h.astype(hT_ref.dtype)


def _choose_time_block(S, cap=8):
    for t in range(min(S, cap), 0, -1):
        if S % t == 0:
            return t
    return 1


def _choose_batch_tile(B, cap=128):
    if B <= 8:
        return B
    for t in range(min(B, cap), 7, -1):
        if B % t == 0 and t % 8 == 0:
            return t
    return B


def gru_layer(x_seq, h0, w_ih, w_hh, b_ih, b_hh):
    """One GRU layer over a full sequence.

    x_seq: (S, B, H_in), h0: (B, H)
    w_ih: (3H, H_in), w_hh: (3H, H), b_ih/b_hh: (3H,)   (PyTorch conventions)
    returns (out_seq (S, B, H), h_T (B, H))
    """
    S, B, H_in = x_seq.shape
    H = h0.shape[-1]
    assert w_ih.shape == (3 * H, H_in)
    assert w_hh.shape == (3 * H, H)

    # ---- Hoisted input projection: one big parallel matmul over the whole sequence.
    # Pre-add the hidden-side r/z biases (purely additive before the sigmoids);
    # keep b_hn separate since it sits inside r * (h_n + b_hn).
    bias_gi = jnp.concatenate([b_ih[:2 * H] + b_hh[:2 * H], b_ih[2 * H:]])
    gi = jnp.einsum(
        "sbk,gk->sbg", x_seq, w_ih,
        precision=lax.Precision.HIGHEST,
        preferred_element_type=jnp.float32,
    ) + bias_gi                                                    # (S, B, 3H) f32
    gi = gi.astype(jnp.float32)
    b_hn = b_hh[2 * H:].reshape(1, H)

    T_BLK = _choose_time_block(S)
    B_TILE = _choose_batch_tile(B)
    n_tblk = S // T_BLK
    n_btile = B // B_TILE

    def nbytes(a):
        return a.size * a.dtype.itemsize

    out_itemsize = jnp.dtype(x_seq.dtype).itemsize
    flops = 2 * S * B * (3 * H) * H                      # recurrent matmul only
    transcendentals = 3 * S * B * H
    bytes_accessed = (nbytes(gi) + nbytes(h0) + nbytes(w_hh) + nbytes(b_hn)
                      + S * B * H * out_itemsize + B * H * out_itemsize)

    out_seq, h_T = pl.pallas_call(
        _gru_layer_kernel,
        out_shape=(
            jax.ShapeDtypeStruct((S, B, H), x_seq.dtype),
            jax.ShapeDtypeStruct((B, H), x_seq.dtype),
        ),
        grid_spec=pltpu.PrefetchScalarGridSpec(
            num_scalar_prefetch=0,
            grid=(n_btile, n_tblk),
            in_specs=[
                pl.BlockSpec((T_BLK, B_TILE, 3 * H), lambda b, t: (t, b, 0)),  # GI block
                pl.BlockSpec((B_TILE, H), lambda b, t: (b, 0)),                # h0 (resident)
                pl.BlockSpec((3 * H, H), lambda b, t: (0, 0)),                 # W_hh (resident)
                pl.BlockSpec((1, H), lambda b, t: (0, 0)),                     # b_hn
            ],
            out_specs=[
                pl.BlockSpec((T_BLK, B_TILE, H), lambda b, t: (t, b, 0)),      # outputs
                pl.BlockSpec((B_TILE, H), lambda b, t: (b, 0)),                # final hidden
            ],
            scratch_shapes=[pltpu.VMEM((B_TILE, H), jnp.float32)],
        ),
        compiler_params=pltpu.CompilerParams(
            # Batch tiles are independent (megacore-parallel on v7x);
            # the time recurrence must stay sequential.
            dimension_semantics=("parallel", "arbitrary"),
        ),
        cost_estimate=pl.CostEstimate(
            flops=flops,
            transcendentals=transcendentals,
            bytes_accessed=bytes_accessed,
        ),
    )(gi, h0, w_hh, b_hn)
    return out_seq, h_T


def gru_forward(x, h0, params):
    """Multi-layer GRU (batch_first=False, unidirectional).

    x: (S, B, H), h0: (num_layers, B, H)
    params: list of (w_ih, w_hh, b_ih, b_hh) per layer.
    returns (outputs (S, B, H), h_n (num_layers, B, H))
    """
    layer_in = x
    h_finals = []
    for l, (w_ih, w_hh, b_ih, b_hh) in enumerate(params):
        layer_in, h_T = gru_layer(layer_in, h0[l], w_ih, w_hh, b_ih, b_hh)
        h_finals.append(h_T)
    return layer_in, jnp.stack(h_finals, axis=0)


def generator_forward(x, hidden, params, seq_len=None, force=False):
    """Mirrors Generator.forward."""
    if force:
        assert seq_len is None
        outputs, hidden = gru_forward(x, hidden, params)
    else:
        assert seq_len
        outs = []
        x_t = x  # NOTE: matches the PyTorch reference — x_t is never reassigned.
        for _ in range(seq_len):
            out, hidden = gru_forward(x_t, hidden, params)
            # torch's out.squeeze(1): drop dim 1 only if it is size 1.
            out_step = jnp.squeeze(out, axis=1) if out.shape[1] == 1 else out
            outs.append(out_step)
            # TODO(synk): the data-dependent early break (`out.topk(1)` index == 1)
            # needs a host sync / dynamic shapes; the loop runs the full seq_len here.
        outputs = jnp.stack(outs, axis=0)
    return outputs, hidden


# ---------------------------------------------------------------------------
# Pure-JAX reference (same math, high-precision matmuls) for correctness check.
# ---------------------------------------------------------------------------
def gru_reference(x, h0, params):
    HIGH = lax.Precision.HIGHEST

    def cell(x_t, h_prev, w_ih, w_hh, b_ih, b_hh):
        H = h_prev.shape[-1]
        gi = jnp.dot(x_t, w_ih.T, precision=HIGH) + b_ih
        gh = jnp.dot(h_prev, w_hh.T, precision=HIGH) + b_hh
        i_r, i_z, i_n = gi[:, :H], gi[:, H:2 * H], gi[:, 2 * H:]
        h_r, h_z, h_n = gh[:, :H], gh[:, H:2 * H], gh[:, 2 * H:]
        r = jax.nn.sigmoid(i_r + h_r)
        z = jax.nn.sigmoid(i_z + h_z)
        n = jnp.tanh(i_n + r * h_n)
        return (1.0 - z) * n + z * h_prev

    layer_in = x
    h_finals = []
    for l, (w_ih, w_hh, b_ih, b_hh) in enumerate(params):
        h = h0[l]
        outs = []
        for t in range(x.shape[0]):
            h = cell(layer_in[t], h, w_ih, w_hh, b_ih, b_hh)
            outs.append(h)
        layer_in = jnp.stack(outs, axis=0)
        h_finals.append(h)
    return layer_in, jnp.stack(h_finals, axis=0)


if __name__ == "__main__":
    hidden_size = 32
    num_layers = 2
    batch = 2
    seq = 8

    key = jax.random.PRNGKey(0)
    keys = jax.random.split(key, 2 + 4 * num_layers)

    # Inputs consistent with the module: x (seq, batch, hidden), hidden from init_hidden.
    x = jax.random.normal(keys[0], (seq, batch, hidden_size), dtype=jnp.float32)
    h0 = jax.random.uniform(keys[1], (num_layers, batch, hidden_size), dtype=jnp.float32)

    # Deterministic "nn.GRU" weights (uniform(+-1/sqrt(H)) like PyTorch default).
    bound = 1.0 / (hidden_size ** 0.5)
    params = []
    ki = 2
    for l in range(num_layers):
        w_ih = jax.random.uniform(keys[ki], (3 * hidden_size, hidden_size),
                                  minval=-bound, maxval=bound, dtype=jnp.float32); ki += 1
        w_hh = jax.random.uniform(keys[ki], (3 * hidden_size, hidden_size),
                                  minval=-bound, maxval=bound, dtype=jnp.float32); ki += 1
        b_ih = jax.random.uniform(keys[ki], (3 * hidden_size,),
                                  minval=-bound, maxval=bound, dtype=jnp.float32); ki += 1
        b_hh = jax.random.uniform(keys[ki], (3 * hidden_size,),
                                  minval=-bound, maxval=bound, dtype=jnp.float32); ki += 1
        params.append((w_ih, w_hh, b_ih, b_hh))

    # force=True path (full-sequence teacher forcing), as in Generator.forward.
    outputs, h_n = generator_forward(x, h0, params, seq_len=None, force=True)
    outputs = jax.block_until_ready(outputs)
    h_n = jax.block_until_ready(h_n)

    ref_out, ref_h = gru_reference(x, h0, params)

    assert outputs.shape == (seq, batch, hidden_size)
    assert h_n.shape == (num_layers, batch, hidden_size)
    assert jnp.allclose(outputs, ref_out, atol=2e-3, rtol=2e-3)
    assert jnp.allclose(h_n, ref_h, atol=2e-3, rtol=2e-3)

    print("KERNEL_OK")
</pallas_src>

<mosaic_0001>
module attributes {stable_mosaic.version = 11 : i64} {
  func.func @_gru_layer_kernel(%arg0: i32, %arg1: i32, %arg2: memref<8x2x96xf32, #tpu.memory_space<vmem>>, %arg3: memref<2x32xf32, #tpu.memory_space<vmem>>, %arg4: memref<96x32xf32, #tpu.memory_space<vmem>>, %arg5: memref<1x32xf32, #tpu.memory_space<vmem>>, %arg6: memref<8x2x32xf32, #tpu.memory_space<vmem>>, %arg7: memref<2x32xf32, #tpu.memory_space<vmem>>, %arg8: memref<2x32xf32, #tpu.memory_space<vmem>>) attributes {dimension_semantics = [#tpu.dimension_semantics<parallel>, #tpu.dimension_semantics<arbitrary>], iteration_bounds = array<i64: 1, 1>, scalar_prefetch = 0 : i64, scratch_operands = 1 : i64, tpu.core_type = #tpu.core_type<tc>, window_params = [{transform_indices = @transform_0, window_bounds = array<i64: 8, 2, 96>}, {transform_indices = @transform_1, window_bounds = array<i64: 2, 32>}, {pipeline_mode = #tpu.pipeline_mode<synchronous>, transform_indices = @transform_2, window_bounds = array<i64: 96, 32>}, {pipeline_mode = #tpu.pipeline_mode<synchronous>, transform_indices = @transform_3, window_bounds = array<i64: 1, 32>}, {transform_indices = @transform_4, window_bounds = array<i64: 8, 2, 32>}, {transform_indices = @transform_5, window_bounds = array<i64: 2, 32>}]} {
    %c0_i32 = arith.constant 0 : i32
    %0 = arith.cmpi eq, %arg1, %c0_i32 : i32
    %1 = arith.extui %0 : i1 to i32
    %c0_i32_0 = arith.constant 0 : i32
    %2 = arith.cmpi ne, %1, %c0_i32_0 : i32
    scf.if %2 {
      %c0_74 = arith.constant 0 : index
      %c0_75 = arith.constant 0 : index
      %292 = vector.load %arg3[%c0_74, %c0_75] : memref<2x32xf32, #tpu.memory_space<vmem>>, vector<2x32xf32>
      %c0_76 = arith.constant 0 : index
      %c0_77 = arith.constant 0 : index
      %293 = vector.load %arg8[%c0_76, %c0_77] : memref<2x32xf32, #tpu.memory_space<vmem>>, vector<2x32xf32>
      tpu.vector_store %arg8[%c0_76, %c0_77], %292 {strides = array<i32>} : memref<2x32xf32, #tpu.memory_space<vmem>>, vector<2x32xf32>,
    } else {
    }
    %c0 = arith.constant 0 : index
    %c0_1 = arith.constant 0 : index
    %3 = vector.load %arg4[%c0, %c0_1] : memref<96x32xf32, #tpu.memory_space<vmem>>, vector<96x32xf32>
    %c0_2 = arith.constant 0 : index
    %c0_3 = arith.constant 0 : index
    %4 = vector.load %arg5[%c0_2, %c0_3] : memref<1x32xf32, #tpu.memory_space<vmem>>, vector<1x32xf32>
    %5 = vector.shape_cast %4 : vector<1x32xf32> to vector<1x32xf32>
    %6 = vector.broadcast %5 : vector<1x32xf32> to vector<2x32xf32>
    %c0_4 = arith.constant 0 : index
    %c0_5 = arith.constant 0 : index
    %7 = vector.load %arg8[%c0_4, %c0_5] : memref<2x32xf32, #tpu.memory_space<vmem>>, vector<2x32xf32>
    %c0_i32_6 = arith.constant 0 : i32
    %8 = arith.index_cast %c0_i32_6 : i32 to index
    %c0_7 = arith.constant 0 : index
    %c0_8 = arith.constant 0 : index
    %9 = vector.load %arg2[%8, %c0_7, %c0_8] : memref<8x2x96xf32, #tpu.memory_space<vmem>>, vector<1x2x96xf32>
    %10 = vector.shape_cast %9 : vector<1x2x96xf32> to vector<2x96xf32>
    %cst = arith.constant dense<0.000000e+00> : vector<2x96xf32>
    %11 = tpu.matmul %7, %3, %cst {dimension_numbers = #tpu.dot_dimension_numbers<[1], [1], [0], [0], [0, 0, 1, 0], [], []>} : vector<2x32xf32>, vector<96x32xf32>, vector<2x96xf32> -> vector<2x96xf32>
    %12 = vector.extract_strided_slice %10 {offsets = [0, 0], sizes = [2, 32], strides = [1, 1]} : vector<2x96xf32> to vector<2x32xf32>
    %13 = vector.extract_strided_slice %11 {offsets = [0, 0], sizes = [2, 32], strides = [1, 1]} : vector<2x96xf32> to vector<2x32xf32>
    %14 = arith.addf %12, %13 : vector<2x32xf32>
    %15 = arith.negf %14 : vector<2x32xf32>
    %16 = math.exp %15 : vector<2x32xf32>
    %cst_9 = arith.constant 1.000000e+00 : f32
    %17 = vector.broadcast %cst_9 : f32 to vector<2x32xf32>
    %18 = arith.addf %17, %16 : vector<2x32xf32>
    %19 = arith.divf %17, %18 : vector<2x32xf32>
    %20 = vector.extract_strided_slice %10 {offsets = [0, 32], sizes = [2, 32], strides = [1, 1]} : vector<2x96xf32> to vector<2x32xf32>
    %21 = vector.extract_strided_slice %11 {offsets = [0, 32], sizes = [2, 32], strides = [1, 1]} : vector<2x96xf32> to vector<2x32xf32>
    %22 = arith.addf %20, %21 : vector<2x32xf32>
    %23 = arith.negf %22 : vector<2x32xf32>
    %24 = math.exp %23 : vector<2x32xf32>
    %cst_10 = arith.constant 1.000000e+00 : f32
    %25 = vector.broadcast %cst_10 : f32 to vector<2x32xf32>
    %26 = arith.addf %25, %24 : vector<2x32xf32>
    %27 = arith.divf %25, %26 : vector<2x32xf32>
    %28 = vector.extract_strided_slice %10 {offsets = [0, 64], sizes = [2, 32], strides = [1, 1]} : vector<2x96xf32> to vector<2x32xf32>
    %29 = vector.extract_strided_slice %11 {offsets = [0, 64], sizes = [2, 32], strides = [1, 1]} : vector<2x96xf32> to vector<2x32xf32>
    %30 = arith.addf %29, %6 : vector<2x32xf32>
    %31 = arith.mulf %19, %30 : vector<2x32xf32>
    %32 = arith.addf %28, %31 : vector<2x32xf32>
    %33 = math.tanh %32 : vector<2x32xf32>
    %cst_11 = arith.constant 1.000000e+00 : f32
    %34 = vector.broadcast %cst_11 : f32 to vector<2x32xf32>
    %35 = arith.subf %34, %27 : vector<2x32xf32>
    %36 = arith.mulf %35, %33 : vector<2x32xf32>
    %37 = arith.mulf %27, %7 : vector<2x32xf32>
    %38 = arith.addf %36, %37 : vector<2x32xf32>
    %39 = arith.index_cast %c0_i32_6 : i32 to index
    %c0_12 = arith.constant 0 : index
    %c0_13 = arith.constant 0 : index
    %40 = vector.load %arg6[%39, %c0_12, %c0_13] : memref<8x2x32xf32, #tpu.memory_space<vmem>>, vector<1x2x32xf32>
    %41 = vector.shape_cast %40 : vector<1x2x32xf32> to vector<2x32xf32>
    %42 = vector.shape_cast %38 : vector<2x32xf32> to vector<1x2x32xf32>
    tpu.vector_store %arg6[%39, %c0_12, %c0_13], %42 {strides = array<i32>} : memref<8x2x32xf32, #tpu.memory_space<vmem>>, vector<1x2x32xf32>,
    %c1_i32 = arith.constant 1 : i32
    %43 = arith.index_cast %c1_i32 : i32 to index
    %c0_14 = arith.constant 0 : index
    %c0_15 = arith.constant 0 : index
    %44 = vector.load %arg2[%43, %c0_14, %c0_15] : memref<8x2x96xf32, #tpu.memory_space<vmem>>, vector<1x2x96xf32>
    %45 = vector.shape_cast %44 : vector<1x2x96xf32> to vector<2x96xf32>
    %cst_16 = arith.constant dense<0.000000e+00> : vector<2x96xf32>
    %46 = tpu.matmul %38, %3, %cst_16 {dimension_numbers = #tpu.dot_dimension_numbers<[1], [1], [0], [0], [0, 0, 1, 0], [], []>} : vector<2x32xf32>, vector<96x32xf32>, vector<2x96xf32> -> vector<2x96xf32>
    %47 = vector.extract_strided_slice %45 {offsets = [0, 0], sizes = [2, 32], strides = [1, 1]} : vector<2x96xf32> to vector<2x32xf32>
    %48 = vector.extract_strided_slice %46 {offsets = [0, 0], sizes = [2, 32], strides = [1, 1]} : vector<2x96xf32> to vector<2x32xf32>
    %49 = arith.addf %47, %48 : vector<2x32xf32>
    %50 = arith.negf %49 : vector<2x32xf32>
    %51 = math.exp %50 : vector<2x32xf32>
    %cst_17 = arith.constant 1.000000e+00 : f32
    %52 = vector.broadcast %cst_17 : f32 to vector<2x32xf32>
    %53 = arith.addf %52, %51 : vector<2x32xf32>
    %54 = arith.divf %52, %53 : vector<2x32xf32>
    %55 = vector.extract_strided_slice %45 {offsets = [0, 32], sizes = [2, 32], strides = [1, 1]} : vector<2x96xf32> to vector<2x32xf32>
    %56 = vector.extract_strided_slice %46 {offsets = [0, 32], sizes = [2, 32], strides = [1, 1]} : vector<2x96xf32> to vector<2x32xf32>
    %57 = arith.addf %55, %56 : vector<2x32xf32>
    %58 = arith.negf %57 : vector<2x32xf32>
    %59 = math.exp %58 : vector<2x32xf32>
    %cst_18 = arith.constant 1.000000e+00 : f32
    %60 = vector.broadcast %cst_18 : f32 to vector<2x32xf32>
    %61 = arith.addf %60, %59 : vector<2x32xf32>
    %62 = arith.divf %60, %61 : vector<2x32xf32>
    %63 = vector.extract_strided_slice %45 {offsets = [0, 64], sizes = [2, 32], strides = [1, 1]} : vector<2x96xf32> to vector<2x32xf32>
    %64 = vector.extract_strided_slice %46 {offsets = [0, 64], sizes = [2, 32], strides = [1, 1]} : vector<2x96xf32> to vector<2x32xf32>
    %65 = arith.addf %64, %6 : vector<2x32xf32>
    %66 = arith.mulf %54, %65 : vector<2x32xf32>
    %67 = arith.addf %63, %66 : vector<2x32xf32>
    %68 = math.tanh %67 : vector<2x32xf32>
    %cst_19 = arith.constant 1.000000e+00 : f32
    %69 = vector.broadcast %cst_19 : f32 to vector<2x32xf32>
    %70 = arith.subf %69, %62 : vector<2x32xf32>
    %71 = arith.mulf %70, %68 : vector<2x32xf32>
    %72 = arith.mulf %62, %38 : vector<2x32xf32>
    %73 = arith.addf %71, %72 : vector<2x32xf32>
    %74 = arith.index_cast %c1_i32 : i32 to index
    %c0_20 = arith.constant 0 : index
    %c0_21 = arith.constant 0 : index
    %75 = vector.load %arg6[%74, %c0_20, %c0_21] : memref<8x2x32xf32, #tpu.memory_space<vmem>>, vector<1x2x32xf32>
    %76 = vector.shape_cast %75 : vector<1x2x32xf32> to vector<2x32xf32>
    %77 = vector.shape_cast %73 : vector<2x32xf32> to vector<1x2x32xf32>
    tpu.vector_store %arg6[%74, %c0_20, %c0_21], %77 {strides = array<i32>} : memref<8x2x32xf32, #tpu.memory_space<vmem>>, vector<1x2x32xf32>,
    %c2_i32 = arith.constant 2 : i32
    %78 = arith.index_cast %c2_i32 : i32 to index
    %c0_22 = arith.constant 0 : index
    %c0_23 = arith.constant 0 : index
    %79 = vector.load %arg2[%78, %c0_22, %c0_23] : memref<8x2x96xf32, #tpu.memory_space<vmem>>, vector<1x2x96xf32>
    %80 = vector.shape_cast %79 : vector<1x2x96xf32> to vector<2x96xf32>
    %cst_24 = arith.constant dense<0.000000e+00> : vector<2x96xf32>
    %81 = tpu.matmul %73, %3, %cst_24 {dimension_numbers = #tpu.dot_dimension_numbers<[1], [1], [0], [0], [0, 0, 1, 0], [], []>} : vector<2x32xf32>, vector<96x32xf32>, vector<2x96xf32> -> vector<2x96xf32>
    %82 = vector.extract_strided_slice %80 {offsets = [0, 0], sizes = [2, 32], strides = [1, 1]} : vector<2x96xf32> to vector<2x32xf32>
    %83 = vector.extract_strided_slice %81 {offsets = [0, 0], sizes = [2, 32], strides = [1, 1]} : vector<2x96xf32> to vector<2x32xf32>
    %84 = arith.addf %82, %83 : vector<2x32xf32>
    %85 = arith.negf %84 : vector<2x32xf32>
    %86 = math.exp %85 : vector<2x32xf32>
    %cst_25 = arith.constant 1.000000e+00 : f32
    %87 = vector.broadcast %cst_25 : f32 to vector<2x32xf32>
    %88 = arith.addf %87, %86 : vector<2x32xf32>
    %89 = arith.divf %87, %88 : vector<2x32xf32>
    %90 = vector.extract_strided_slice %80 {offsets = [0, 32], sizes = [2, 32], strides = [1, 1]} : vector<2x96xf32> to vector<2x32xf32>
    %91 = vector.extract_strided_slice %81 {offsets = [0, 32], sizes = [2, 32], strides = [1, 1]} : vector<2x96xf32> to vector<2x32xf32>
    %92 = arith.addf %90, %91 : vector<2x32xf32>
    %93 = arith.negf %92 : vector<2x32xf32>
    %94 = math.exp %93 : vector<2x32xf32>
    %cst_26 = arith.constant 1.000000e+00 : f32
    %95 = vector.broadcast %cst_26 : f32 to vector<2x32xf32>
    %96 = arith.addf %95, %94 : vector<2x32xf32>
    %97 = arith.divf %95, %96 : vector<2x32xf32>
    %98 = vector.extract_strided_slice %80 {offsets = [0, 64], sizes = [2, 32], strides = [1, 1]} : vector<2x96xf32> to vector<2x32xf32>
    %99 = vector.extract_strided_slice %81 {offsets = [0, 64], sizes = [2, 32], strides = [1, 1]} : vector<2x96xf32> to vector<2x32xf32>
    %100 = arith.addf %99, %6 : vector<2x32xf32>
    %101 = arith.mulf %89, %100 : vector<2x32xf32>
    %102 = arith.addf %98, %101 : vector<2x32xf32>
    %103 = math.tanh %102 : vector<2x32xf32>
    %cst_27 = arith.constant 1.000000e+00 : f32
    %104 = vector.broadcast %cst_27 : f32 to vector<2x32xf32>
    %105 = arith.subf %104, %97 : vector<2x32xf32>
    %106 = arith.mulf %105, %103 : vector<2x32xf32>
    %107 = arith.mulf %97, %73 : vector<2x32xf32>
    %108 = arith.addf %106, %107 : vector<2x32xf32>
    %109 = arith.index_cast %c2_i32 : i32 to index
    %c0_28 = arith.constant 0 : index
    %c0_29 = arith.constant 0 : index
    %110 = vector.load %arg6[%109, %c0_28, %c0_29] : memref<8x2x32xf32, #tpu.memory_space<vmem>>, vector<1x2x32xf32>
    %111 = vector.shape_cast %110 : vector<1x2x32xf32> to vector<2x32xf32>
    %112 = vector.shape_cast %108 : vector<2x32xf32> to vector<1x2x32xf32>
    tpu.vector_store %arg6[%109, %c0_28, %c0_29], %112 {strides = array<i32>} : memref<8x2x32xf32, #tpu.memory_space<vmem>>, vector<1x2x32xf32>,
    %c3_i32 = arith.constant 3 : i32
    %113 = arith.index_cast %c3_i32 : i32 to index
    %c0_30 = arith.constant 0 : index
    %c0_31 = arith.constant 0 : index
    %114 = vector.load %arg2[%113, %c0_30, %c0_31] : memref<8x2x96xf32, #tpu.memory_space<vmem>>, vector<1x2x96xf32>
    %115 = vector.shape_cast %114 : vector<1x2x96xf32> to vector<2x96xf32>
    %cst_32 = arith.constant dense<0.000000e+00> : vector<2x96xf32>
    %116 = tpu.matmul %108, %3, %cst_32 {dimension_numbers = #tpu.dot_dimension_numbers<[1], [1], [0], [0], [0, 0, 1, 0], [], []>} : vector<2x32xf32>, vector<96x32xf32>, vector<2x96xf32> -> vector<2x96xf32>
    %117 = vector.extract_strided_slice %115 {offsets = [0, 0], sizes = [2, 32], strides = [1, 1]} : vector<2x96xf32> to vector<2x32xf32>
    %118 = vector.extract_strided_slice %116 {offsets = [0, 0], sizes = [2, 32], strides = [1, 1]} : vector<2x96xf32> to vector<2x32xf32>
    %119 = arith.addf %117, %118 : vector<2x32xf32>
    %120 = arith.negf %119 : vector<2x32xf32>
    %121 = math.exp %120 : vector<2x32xf32>
    %cst_33 = arith.constant 1.000000e+00 : f32
    %122 = vector.broadcast %cst_33 : f32 to vector<2x32xf32>
    %123 = arith.addf %122, %121 : vector<2x32xf32>
    %124 = arith.divf %122, %123 : vector<2x32xf32>
    %125 = vector.extract_strided_slice %115 {offsets = [0, 32], sizes = [2, 32], strides = [1, 1]} : vector<2x96xf32> to vector<2x32xf32>
    %126 = vector.extract_strided_slice %116 {offsets = [0, 32], sizes = [2, 32], strides = [1, 1]} : vector<2x96xf32> to vector<2x32xf32>
    %127 = arith.addf %125, %126 : vector<2x32xf32>
    %128 = arith.negf %127 : vector<2x32xf32>
    %129 = math.exp %128 : vector<2x32xf32>
    %cst_34 = arith.constant 1.000000e+00 : f32
    %130 = vector.broadcast %cst_34 : f32 to vector<2x32xf32>
    %131 = arith.addf %130, %129 : vector<2x32xf32>
    %132 = arith.divf %130, %131 : vector<2x32xf32>
    %133 = vector.extract_strided_slice %115 {offsets = [0, 64], sizes = [2, 32], strides = [1, 1]} : vector<2x96xf32> to vector<2x32xf32>
    %134 = vector.extract_strided_slice %116 {offsets = [0, 64], sizes = [2, 32], strides = [1, 1]} : vector<2x96xf32> to vector<2x32xf32>
    %135 = arith.addf %134, %6 : vector<2x32xf32>
    %136 = arith.mulf %124, %135 : vector<2x32xf32>
    %137 = arith.addf %133, %136 : vector<2x32xf32>
    %138 = math.tanh %137 : vector<2x32xf32>
    %cst_35 = arith.constant 1.000000e+00 : f32
    %139 = vector.broadcast %cst_35 : f32 to vector<2x32xf32>
    %140 = arith.subf %139, %132 : vector<2x32xf32>
    %141 = arith.mulf %140, %138 : vector<2x32xf32>
    %142 = arith.mulf %132, %108 : vector<2x32xf32>
    %143 = arith.addf %141, %142 : vector<2x32xf32>
    %144 = arith.index_cast %c3_i32 : i32 to index
    %c0_36 = arith.constant 0 : index
    %c0_37 = arith.constant 0 : index
    %145 = vector.load %arg6[%144, %c0_36, %c0_37] : memref<8x2x32xf32, #tpu.memory_space<vmem>>, vector<1x2x32xf32>
    %146 = vector.shape_cast %145 : vector<1x2x32xf32> to vector<2x32xf32>
    %147 = vector.shape_cast %143 : vector<2x32xf32> to vector<1x2x32xf32>
    tpu.vector_store %arg6[%144, %c0_36, %c0_37], %147 {strides = array<i32>} : memref<8x2x32xf32, #tpu.memory_space<vmem>>, vector<1x2x32xf32>,
    %c4_i32 = arith.constant 4 : i32
    %148 = arith.index_cast %c4_i32 : i32 to index
    %c0_38 = arith.constant 0 : index
    %c0_39 = arith.constant 0 : index
    %149 = vector.load %arg2[%148, %c0_38, %c0_39] : memref<8x2x96xf32, #tpu.memory_space<vmem>>, vector<1x2x96xf32>
    %150 = vector.shape_cast %149 : vector<1x2x96xf32> to vector<2x96xf32>
    %cst_40 = arith.constant dense<0.000000e+00> : vector<2x96xf32>
    %151 = tpu.matmul %143, %3, %cst_40 {dimension_numbers = #tpu.dot_dimension_numbers<[1], [1], [0], [0], [0, 0, 1, 0], [], []>} : vector<2x32xf32>, vector<96x32xf32>, vector<2x96xf32> -> vector<2x96xf32>
    %152 = vector.extract_strided_slice %150 {offsets = [0, 0], sizes = [2, 32], strides = [1, 1]} : vector<2x96xf32> to vector<2x32xf32>
    %153 = vector.extract_strided_slice %151 {offsets = [0, 0], sizes = [2, 32], strides = [1, 1]} : vector<2x96xf32> to vector<2x32xf32>
    %154 = arith.addf %152, %153 : vector<2x32xf32>
    %155 = arith.negf %154 : vector<2x32xf32>
    %156 = math.exp %155 : vector<2x32xf32>
    %cst_41 = arith.constant 1.000000e+00 : f32
    %157 = vector.broadcast %cst_41 : f32 to vector<2x32xf32>
    %158 = arith.addf %157, %156 : vector<2x32xf32>
    %159 = arith.divf %157, %158 : vector<2x32xf32>
    %160 = vector.extract_strided_slice %150 {offsets = [0, 32], sizes = [2, 32], strides = [1, 1]} : vector<2x96xf32> to vector<2x32xf32>
    %161 = vector.extract_strided_slice %151 {offsets = [0, 32], sizes = [2, 32], strides = [1, 1]} : vector<2x96xf32> to vector<2x32xf32>
    %162 = arith.addf %160, %161 : vector<2x32xf32>
    %163 = arith.negf %162 : vector<2x32xf32>
    %164 = math.exp %163 : vector<2x32xf32>
    %cst_42 = arith.constant 1.000000e+00 : f32
    %165 = vector.broadcast %cst_42 : f32 to vector<2x32xf32>
    %166 = arith.addf %165, %164 : vector<2x32xf32>
    %167 = arith.divf %165, %166 : vector<2x32xf32>
    %168 = vector.extract_strided_slice %150 {offsets = [0, 64], sizes = [2, 32], strides = [1, 1]} : vector<2x96xf32> to vector<2x32xf32>
    %169 = vector.extract_strided_slice %151 {offsets = [0, 64], sizes = [2, 32], strides = [1, 1]} : vector<2x96xf32> to vector<2x32xf32>
    %170 = arith.addf %169, %6 : vector<2x32xf32>
    %171 = arith.mulf %159, %170 : vector<2x32xf32>
    %172 = arith.addf %168, %171 : vector<2x32xf32>
    %173 = math.tanh %172 : vector<2x32xf32>
    %cst_43 = arith.constant 1.000000e+00 : f32
    %174 = vector.broadcast %cst_43 : f32 to vector<2x32xf32>
    %175 = arith.subf %174, %167 : vector<2x32xf32>
    %176 = arith.mulf %175, %173 : vector<2x32xf32>
    %177 = arith.mulf %167, %143 : vector<2x32xf32>
    %178 = arith.addf %176, %177 : vector<2x32xf32>
    %179 = arith.index_cast %c4_i32 : i32 to index
    %c0_44 = arith.constant 0 : index
    %c0_45 = arith.constant 0 : index
    %180 = vector.load %arg6[%179, %c0_44, %c0_45] : memref<8x2x32xf32, #tpu.memory_space<vmem>>, vector<1x2x32xf32>
    %181 = vector.shape_cast %180 : vector<1x2x32xf32> to vector<2x32xf32>
    %182 = vector.shape_cast %178 : vector<2x32xf32> to vector<1x2x32xf32>
    tpu.vector_store %arg6[%179, %c0_44, %c0_45], %182 {strides = array<i32>} : memref<8x2x32xf32, #tpu.memory_space<vmem>>, vector<1x2x32xf32>,
    %c5_i32 = arith.constant 5 : i32
    %183 = arith.index_cast %c5_i32 : i32 to index
    %c0_46 = arith.constant 0 : index
    %c0_47 = arith.constant 0 : index
    %184 = vector.load %arg2[%183, %c0_46, %c0_47] : memref<8x2x96xf32, #tpu.memory_space<vmem>>, vector<1x2x96xf32>
    %185 = vector.shape_cast %184 : vector<1x2x96xf32> to vector<2x96xf32>
    %cst_48 = arith.constant dense<0.000000e+00> : vector<2x96xf32>
    %186 = tpu.matmul %178, %3, %cst_48 {dimension_numbers = #tpu.dot_dimension_numbers<[1], [1], [0], [0], [0, 0, 1, 0], [], []>} : vector<2x32xf32>, vector<96x32xf32>, vector<2x96xf32> -> vector<2x96xf32>
    %187 = vector.extract_strided_slice %185 {offsets = [0, 0], sizes = [2, 32], strides = [1, 1]} : vector<2x96xf32> to vector<2x32xf32>
    %188 = vector.extract_strided_slice %186 {offsets = [0, 0], sizes = [2, 32], strides = [1, 1]} : vector<2x96xf32> to vector<2x32xf32>
    %189 = arith.addf %187, %188 : vector<2x32xf32>
    %190 = arith.negf %189 : vector<2x32xf32>
    %191 = math.exp %190 : vector<2x32xf32>
    %cst_49 = arith.constant 1.000000e+00 : f32
    %192 = vector.broadcast %cst_49 : f32 to vector<2x32xf32>
    %193 = arith.addf %192, %191 : vector<2x32xf32>
    %194 = arith.divf %192, %193 : vector<2x32xf32>
    %195 = vector.extract_strided_slice %185 {offsets = [0, 32], sizes = [2, 32], strides = [1, 1]} : vector<2x96xf32> to vector<2x32xf32>
    %196 = vector.extract_strided_slice %186 {offsets = [0, 32], sizes = [2, 32], strides = [1, 1]} : vector<2x96xf32> to vector<2x32xf32>
    %197 = arith.addf %195, %196 : vector<2x32xf32>
    %198 = arith.negf %197 : vector<2x32xf32>
    %199 = math.exp %198 : vector<2x32xf32>
    %cst_50 = arith.constant 1.000000e+00 : f32
    %200 = vector.broadcast %cst_50 : f32 to vector<2x32xf32>
    %201 = arith.addf %200, %199 : vector<2x32xf32>
    %202 = arith.divf %200, %201 : vector<2x32xf32>
    %203 = vector.extract_strided_slice %185 {offsets = [0, 64], sizes = [2, 32], strides = [1, 1]} : vector<2x96xf32> to vector<2x32xf32>
    %204 = vector.extract_strided_slice %186 {offsets = [0, 64], sizes = [2, 32], strides = [1, 1]} : vector<2x96xf32> to vector<2x32xf32>
    %205 = arith.addf %204, %6 : vector<2x32xf32>
    %206 = arith.mulf %194, %205 : vector<2x32xf32>
    %207 = arith.addf %203, %206 : vector<2x32xf32>
    %208 = math.tanh %207 : vector<2x32xf32>
    %cst_51 = arith.constant 1.000000e+00 : f32
    %209 = vector.broadcast %cst_51 : f32 to vector<2x32xf32>
    %210 = arith.subf %209, %202 : vector<2x32xf32>
    %211 = arith.mulf %210, %208 : vector<2x32xf32>
    %212 = arith.mulf %202, %178 : vector<2x32xf32>
    %213 = arith.addf %211, %212 : vector<2x32xf32>
    %214 = arith.index_cast %c5_i32 : i32 to index
    %c0_52 = arith.constant 0 : index
    %c0_53 = arith.constant 0 : index
    %215 = vector.load %arg6[%214, %c0_52, %c0_53] : memref<8x2x32xf32, #tpu.memory_space<vmem>>, vector<1x2x32xf32>
    %216 = vector.shape_cast %215 : vector<1x2x32xf32> to vector<2x32xf32>
    %217 = vector.shape_cast %213 : vector<2x32xf32> to vector<1x2x32xf32>
    tpu.vector_store %arg6[%214, %c0_52, %c0_53], %217 {strides = array<i32>} : memref<8x2x32xf32, #tpu.memory_space<vmem>>, vector<1x2x32xf32>,
    %c6_i32 = arith.constant 6 : i32
    %218 = arith.index_cast %c6_i32 : i32 to index
    %c0_54 = arith.constant 0 : index
    %c0_55 = arith.constant 0 : index
    %219 = vector.load %arg2[%218, %c0_54, %c0_55] : memref<8x2x96xf32, #tpu.memory_space<vmem>>, vector<1x2x96xf32>
    %220 = vector.shape_cast %219 : vector<1x2x96xf32> to vector<2x96xf32>
    %cst_56 = arith.constant dense<0.000000e+00> : vector<2x96xf32>
    %221 = tpu.matmul %213, %3, %cst_56 {dimension_numbers = #tpu.dot_dimension_numbers<[1], [1], [0], [0], [0, 0, 1, 0], [], []>} : vector<2x32xf32>, vector<96x32xf32>, vector<2x96xf32> -> vector<2x96xf32>
    %222 = vector.extract_strided_slice %220 {offsets = [0, 0], sizes = [2, 32], strides = [1, 1]} : vector<2x96xf32> to vector<2x32xf32>
    %223 = vector.extract_strided_slice %221 {offsets = [0, 0], sizes = [2, 32], strides = [1, 1]} : vector<2x96xf32> to vector<2x32xf32>
    %224 = arith.addf %222, %223 : vector<2x32xf32>
    %225 = arith.negf %224 : vector<2x32xf32>
    %226 = math.exp %225 : vector<2x32xf32>
    %cst_57 = arith.constant 1.000000e+00 : f32
    %227 = vector.broadcast %cst_57 : f32 to vector<2x32xf32>
    %228 = arith.addf %227, %226 : vector<2x32xf32>
    %229 = arith.divf %227, %228 : vector<2x32xf32>
    %230 = vector.extract_strided_slice %220 {offsets = [0, 32], sizes = [2, 32], strides = [1, 1]} : vector<2x96xf32> to vector<2x32xf32>
    %231 = vector.extract_strided_slice %221 {offsets = [0, 32], sizes = [2, 32], strides = [1, 1]} : vector<2x96xf32> to vector<2x32xf32>
    %232 = arith.addf %230, %231 : vector<2x32xf32>
    %233 = arith.negf %232 : vector<2x32xf32>
    %234 = math.exp %233 : vector<2x32xf32>
    %cst_58 = arith.constant 1.000000e+00 : f32
    %235 = vector.broadcast %cst_58 : f32 to vector<2x32xf32>
    %236 = arith.addf %235, %234 : vector<2x32xf32>
    %237 = arith.divf %235, %236 : vector<2x32xf32>
    %238 = vector.extract_strided_slice %220 {offsets = [0, 64], sizes = [2, 32], strides = [1, 1]} : vector<2x96xf32> to vector<2x32xf32>
    %239 = vector.extract_strided_slice %221 {offsets = [0, 64], sizes = [2, 32], strides = [1, 1]} : vector<2x96xf32> to vector<2x32xf32>
    %240 = arith.addf %239, %6 : vector<2x32xf32>
    %241 = arith.mulf %229, %240 : vector<2x32xf32>
    %242 = arith.addf %238, %241 : vector<2x32xf32>
    %243 = math.tanh %242 : vector<2x32xf32>
    %cst_59 = arith.constant 1.000000e+00 : f32
    %244 = vector.broadcast %cst_59 : f32 to vector<2x32xf32>
    %245 = arith.subf %244, %237 : vector<2x32xf32>
    %246 = arith.mulf %245, %243 : vector<2x32xf32>
    %247 = arith.mulf %237, %213 : vector<2x32xf32>
    %248 = arith.addf %246, %247 : vector<2x32xf32>
    %249 = arith.index_cast %c6_i32 : i32 to index
    %c0_60 = arith.constant 0 : index
    %c0_61 = arith.constant 0 : index
    %250 = vector.load %arg6[%249, %c0_60, %c0_61] : memref<8x2x32xf32, #tpu.memory_space<vmem>>, vector<1x2x32xf32>
    %251 = vector.shape_cast %250 : vector<1x2x32xf32> to vector<2x32xf32>
    %252 = vector.shape_cast %248 : vector<2x32xf32> to vector<1x2x32xf32>
    tpu.vector_store %arg6[%249, %c0_60, %c0_61], %252 {strides = array<i32>} : memref<8x2x32xf32, #tpu.memory_space<vmem>>, vector<1x2x32xf32>,
    %c7_i32 = arith.constant 7 : i32
    %253 = arith.index_cast %c7_i32 : i32 to index
    %c0_62 = arith.constant 0 : index
    %c0_63 = arith.constant 0 : index
    %254 = vector.load %arg2[%253, %c0_62, %c0_63] : memref<8x2x96xf32, #tpu.memory_space<vmem>>, vector<1x2x96xf32>
    %255 = vector.shape_cast %254 : vector<1x2x96xf32> to vector<2x96xf32>
    %cst_64 = arith.constant dense<0.000000e+00> : vector<2x96xf32>
    %256 = tpu.matmul %248, %3, %cst_64 {dimension_numbers = #tpu.dot_dimension_numbers<[1], [1], [0], [0], [0, 0, 1, 0], [], []>} : vector<2x32xf32>, vector<96x32xf32>, vector<2x96xf32> -> vector<2x96xf32>
    %257 = vector.extract_strided_slice %255 {offsets = [0, 0], sizes = [2, 32], strides = [1, 1]} : vector<2x96xf32> to vector<2x32xf32>
    %258 = vector.extract_strided_slice %256 {offsets = [0, 0], sizes = [2, 32], strides = [1, 1]} : vector<2x96xf32> to vector<2x32xf32>
    %259 = arith.addf %257, %258 : vector<2x32xf32>
    %260 = arith.negf %259 : vector<2x32xf32>
    %261 = math.exp %260 : vector<2x32xf32>
    %cst_65 = arith.constant 1.000000e+00 : f32
    %262 = vector.broadcast %cst_65 : f32 to vector<2x32xf32>
    %263 = arith.addf %262, %261 : vector<2x32xf32>
    %264 = arith.divf %262, %263 : vector<2x32xf32>
    %265 = vector.extract_strided_slice %255 {offsets = [0, 32], sizes = [2, 32], strides = [1, 1]} : vector<2x96xf32> to vector<2x32xf32>
    %266 = vector.extract_strided_slice %256 {offsets = [0, 32], sizes = [2, 32], strides = [1, 1]} : vector<2x96xf32> to vector<2x32xf32>
    %267 = arith.addf %265, %266 : vector<2x32xf32>
    %268 = arith.negf %267 : vector<2x32xf32>
    %269 = math.exp %268 : vector<2x32xf32>
    %cst_66 = arith.constant 1.000000e+00 : f32
    %270 = vector.broadcast %cst_66 : f32 to vector<2x32xf32>
    %271 = arith.addf %270, %269 : vector<2x32xf32>
    %272 = arith.divf %270, %271 : vector<2x32xf32>
    %273 = vector.extract_strided_slice %255 {offsets = [0, 64], sizes = [2, 32], strides = [1, 1]} : vector<2x96xf32> to vector<2x32xf32>
    %274 = vector.extract_strided_slice %256 {offsets = [0, 64], sizes = [2, 32], strides = [1, 1]} : vector<2x96xf32> to vector<2x32xf32>
    %275 = arith.addf %274, %6 : vector<2x32xf32>
    %276 = arith.mulf %264, %275 : vector<2x32xf32>
    %277 = arith.addf %273, %276 : vector<2x32xf32>
    %278 = math.tanh %277 : vector<2x32xf32>
    %cst_67 = arith.constant 1.000000e+00 : f32
    %279 = vector.broadcast %cst_67 : f32 to vector<2x32xf32>
    %280 = arith.subf %279, %272 : vector<2x32xf32>
    %281 = arith.mulf %280, %278 : vector<2x32xf32>
    %282 = arith.mulf %272, %248 : vector<2x32xf32>
    %283 = arith.addf %281, %282 : vector<2x32xf32>
    %284 = arith.index_cast %c7_i32 : i32 to index
    %c0_68 = arith.constant 0 : index
    %c0_69 = arith.constant 0 : index
    %285 = vector.load %arg6[%284, %c0_68, %c0_69] : memref<8x2x32xf32, #tpu.memory_space<vmem>>, vector<1x2x32xf32>
    %286 = vector.shape_cast %285 : vector<1x2x32xf32> to vector<2x32xf32>
    %287 = vector.shape_cast %283 : vector<2x32xf32> to vector<1x2x32xf32>
    tpu.vector_store %arg6[%284, %c0_68, %c0_69], %287 {strides = array<i32>} : memref<8x2x32xf32, #tpu.memory_space<vmem>>, vector<1x2x32xf32>,
    %c8_i32 = arith.constant 8 : i32
    %c0_70 = arith.constant 0 : index
    %c0_71 = arith.constant 0 : index
    %288 = vector.load %arg8[%c0_70, %c0_71] : memref<2x32xf32, #tpu.memory_space<vmem>>, vector<2x32xf32>
    tpu.vector_store %arg8[%c0_70, %c0_71], %283 {strides = array<i32>} : memref<2x32xf32, #tpu.memory_space<vmem>>, vector<2x32xf32>,
    %c0_i32_72 = arith.constant 0 : i32
    %289 = arith.cmpi eq, %arg1, %c0_i32_72 : i32
    %290 = arith.extui %289 : i1 to i32
    %c0_i32_73 = arith.constant 0 : i32
    %291 = arith.cmpi ne, %290, %c0_i32_73 : i32
    scf.if %291 {
      %c0_74 = arith.constant 0 : index
      %c0_75 = arith.constant 0 : index
      %292 = vector.load %arg7[%c0_74, %c0_75] : memref<2x32xf32, #tpu.memory_space<vmem>>, vector<2x32xf32>
      tpu.vector_store %arg7[%c0_74, %c0_75], %283 {strides = array<i32>} : memref<2x32xf32, #tpu.memory_space<vmem>>, vector<2x32xf32>,
    } else {
    }
    return
  }
  func.func @transform_0(%arg0: i32, %arg1: i32) -> (i32, i32, i32) {
    %c0_i32 = arith.constant 0 : i32
    %c0_i32_0 = arith.constant 0 : i32
    return %arg1, %arg0, %c0_i32 : i32, i32, i32
  }
  func.func @transform_1(%arg0: i32, %arg1: i32) -> (i32, i32) {
    %c0_i32 = arith.constant 0 : i32
    %c0_i32_0 = arith.constant 0 : i32
    return %arg0, %c0_i32 : i32, i32
  }
  func.func @transform_2(%arg0: i32, %arg1: i32) -> (i32, i32) {
    %c0_i32 = arith.constant 0 : i32
    %c0_i32_0 = arith.constant 0 : i32
    %c0_i32_1 = arith.constant 0 : i32
    return %c0_i32, %c0_i32_0 : i32, i32
  }
  func.func @transform_3(%arg0: i32, %arg1: i32) -> (i32, i32) {
    %c0_i32 = arith.constant 0 : i32
    %c0_i32_0 = arith.constant 0 : i32
    %c0_i32_1 = arith.constant 0 : i32
    return %c0_i32, %c0_i32_0 : i32, i32
  }
  func.func @transform_4(%arg0: i32, %arg1: i32) -> (i32, i32, i32) {
    %c0_i32 = arith.constant 0 : i32
    %c0_i32_0 = arith.constant 0 : i32
    return %arg1, %arg0, %c0_i32 : i32, i32, i32
  }
  func.func @transform_5(%arg0: i32, %arg1: i32) -> (i32, i32) {
    %c0_i32 = arith.constant 0 : i32
    %c0_i32_0 = arith.constant 0 : i32
    return %arg0, %c0_i32 : i32, i32
  }
}

</mosaic_0001>

<bundles_post_ra>
// kernel: tpu_custom_call.1
= control target key start
LH: loop header
LB: loop body
LE: loop exit
PB: predicated region body
PF: predicated region fallthrough
CT: control target
= control target key end

     0   :  { %11 = vsyncpa [#allocation4], 0  ;;  %vm45_vm0 = vcmask 261120   ;;  %s1241_s0 = inlined_call_operand.vmem [shape: f32[8,2,96], index: 0, kind: input, shape index: {}]   ;;  %s1242_s1 = inlined_call_operand.vmem [shape: f32[2,32], index: 1, kind: input, shape index: {}]   ;;  %s1243_s2 = inlined_call_operand.vmem [shape: f32[96,32], index: 2, kind: input, shape index: {}]   ;;  %s1244_s3 = inlined_call_operand.vmem [shape: f32[1,32], index: 3, kind: input, shape index: {}]   ;;  %s1245_s4 = inlined_call_operand.hbm [shape: f32[8,2,32], index: 4, kind: output, shape index: {0}]   ;;  %s1246_s5 = inlined_call_operand.hbm [shape: f32[2,32], index: 5, kind: output, shape index: {1}]  }
   0x1   :  { %v951_v0 = vld [vmem:[%s1243_s2 + $0x58] sm:$0xff]  ;;  %v960_v1 = vld [vmem:[%s1243_s2 + $0x50] sm:$0xff] }
   0x2   :  { %686 = vmatpush.xpose.msk.msra.mxu0 %vm45_vm0, %v951_v0  ;;  %701 = vmatpush.xpose.msk.msra.mxu1 %vm45_vm0, %v951_v0 }
   0x3   :  { %716 = vmatpush.xpose.msk.msra.mxu2 %vm45_vm0, %v951_v0  ;;  %731 = vmatpush.xpose.msk.msra.mxu3 %vm45_vm0, %v951_v0 }
   0x4   :  { %12 = vsyncpa [#allocation6], 0  ;;  %v973_v2 = vld [vmem:[%s1243_s2 + $0x48] sm:$0xff]  ;;  %v25_v3 = vld [vmem:[%s1242_s1] sm:$0x3]  ;;  %vm26_vm1 = vcmask 254976  }
   0x5   :  { %27 = vst.msk [vmem:[#allocation2] sm:$0x3] %vm26_vm1, %v25_v3  ;;  %v990_v4 = vld [vmem:[%s1243_s2 + $0x40] sm:$0xff]  ;;  %v1003_v5 = vld [vmem:[%s1243_s2 + $0x38] sm:$0xff]  ;;  %s912_s6 = smov 32   ;;  %v1020_v8 = vld [vmem:[%s1243_s2 + $0x30] sm:$0xff] }
   0x6   :  { %687 = vmatpush.xpose.msk.msra.mxu0 %vm45_vm0, %v960_v1  ;;  %702 = vmatpush.xpose.msk.msra.mxu1 %vm45_vm0, %v960_v1  ;;  %v811_v7 = vld [vmem:[%s1244_s3] ss:$0 sm:$0xff]  ;;  %s913_s9 = smov 64   ;;  %v33_v9 = vld [vmem:[%s1243_s2 + $0x28] sm:$0xff]  ;;  %v31_v11 = vld [vmem:[%s1243_s2 + $0x18] sm:$0xff]  ;;  %s914_s22 = smov 96  }
   0x7   :  { %717 = vmatpush.xpose.msk.msra.mxu2 %vm45_vm0, %v960_v1  ;;  %732 = vmatpush.xpose.msk.msra.mxu3 %vm45_vm0, %v960_v1  ;;  %v32_v10 = vld [vmem:[%s1243_s2 + $0x20] sm:$0xff]  ;;  %v30_v12 = vld [vmem:[%s1243_s2 + $0x10] sm:$0xff]  ;;  %v29_v13 = vld [vmem:[%s1243_s2 + $0x8] sm:$0xff]  ;;  %s658_s15 = sshll.u32 %s1245_s4, 4  ;;  %s672_s19 = sshll.u32 %s1246_s5, 4  ;;  %s659_s15 = int_to_ptr.hbm [resolvable:$true] %s658_s15  ;;  %s673_s19 = int_to_ptr.hbm [resolvable:$true] %s672_s19 }
   0x8   :  { %125 = vrot.lane.b32.xlu0 %v811_v7, %s913_s9  ;;  %v28_v14 = vld [vmem:[%s1243_s2] sm:$0xff]  ;;  %s917_s20 = smov 2  }
   0x9   :  { %v44_v18 = vld [vmem:[%s1241_s0] sm:$0x3]  ;;  %v700_v47 = vld [vmem:[%s1241_s0 + $0x2] sm:$0x3] }
   0xa   :  { %688 = vmatpush.xpose.msk.msra.mxu0 %vm45_vm0, %v973_v2  ;;  %703 = vmatpush.xpose.msk.msra.mxu1 %vm45_vm0, %v973_v2 }
   0xb   :  { %718 = vmatpush.xpose.msk.msra.mxu2 %vm45_vm0, %v973_v2  ;;  %733 = vmatpush.xpose.msk.msra.mxu3 %vm45_vm0, %v973_v2 }
   0xc   :  { %v43_v6 = vld [vmem:[#allocation2] sm:$0x3] }
   0xd   :  { %146 = vrot.lane.b32.xlu2 %v43_v6, %s912_s6 }
   0xe   :  { %689 = vmatpush.xpose.msk.msra.mxu0 %vm45_vm0, %v990_v4  ;;  %704 = vmatpush.xpose.msk.msra.mxu1 %vm45_vm0, %v990_v4 }
   0xf   :  { %719 = vmatpush.xpose.msk.msra.mxu2 %vm45_vm0, %v990_v4  ;;  %734 = vmatpush.xpose.msk.msra.mxu3 %vm45_vm0, %v990_v4 }
  0x12   :  { %690 = vmatpush.xpose.msk.msra.mxu0 %vm45_vm0, %v1003_v5  ;;  %705 = vmatpush.xpose.msk.msra.mxu1 %vm45_vm0, %v1003_v5 }
  0x13   :  { %720 = vmatpush.xpose.msk.msra.mxu2 %vm45_vm0, %v1003_v5  ;;  %735 = vmatpush.xpose.msk.msra.mxu3 %vm45_vm0, %v1003_v5 }
  0x16   :  { %691 = vmatpush.xpose.msk.msra.mxu0 %vm45_vm0, %v1020_v8  ;;  %706 = vmatpush.xpose.msk.msra.mxu1 %vm45_vm0, %v1020_v8 }
  0x17   :  { %721 = vmatpush.xpose.msk.msra.mxu2 %vm45_vm0, %v1020_v8  ;;  %736 = vmatpush.xpose.msk.msra.mxu3 %vm45_vm0, %v1020_v8 }
  0x1a   :  { %692 = vmatpush.xpose.msk.msra.mxu0 %vm45_vm0, %v33_v9  ;;  %707 = vmatpush.xpose.msk.msra.mxu1 %vm45_vm0, %v33_v9 }
  0x1b   :  { %722 = vmatpush.xpose.msk.msra.mxu2 %vm45_vm0, %v33_v9  ;;  %737 = vmatpush.xpose.msk.msra.mxu3 %vm45_vm0, %v33_v9 }
  0x1e   :  { %693 = vmatpush.xpose.msk.msra.mxu0 %vm45_vm0, %v32_v10  ;;  %708 = vmatpush.xpose.msk.msra.mxu1 %vm45_vm0, %v32_v10 }
  0x1f   :  { %723 = vmatpush.xpose.msk.msra.mxu2 %vm45_vm0, %v32_v10  ;;  %738 = vmatpush.xpose.msk.msra.mxu3 %vm45_vm0, %v32_v10 }
  0x22   :  { %694 = vmatpush.xpose.msk.msra.mxu0 %vm45_vm0, %v31_v11  ;;  %709 = vmatpush.xpose.msk.msra.mxu1 %vm45_vm0, %v31_v11 }
  0x23   :  { %724 = vmatpush.xpose.msk.msra.mxu2 %vm45_vm0, %v31_v11  ;;  %739 = vmatpush.xpose.msk.msra.mxu3 %vm45_vm0, %v31_v11 }
  0x26   :  { %695 = vmatpush.xpose.msk.msra.mxu0 %vm45_vm0, %v30_v12  ;;  %710 = vmatpush.xpose.msk.msra.mxu1 %vm45_vm0, %v30_v12 }
  0x27   :  { %725 = vmatpush.xpose.msk.msra.mxu2 %vm45_vm0, %v30_v12  ;;  %740 = vmatpush.xpose.msk.msra.mxu3 %vm45_vm0, %v30_v12 }
  0x2a   :  { %696 = vmatpush.xpose.msk.msra.mxu0 %vm45_vm0, %v29_v13  ;;  %711 = vmatpush.xpose.msk.msra.mxu1 %vm45_vm0, %v29_v13 }
  0x2b   :  { %726 = vmatpush.xpose.msk.msra.mxu2 %vm45_vm0, %v29_v13  ;;  %741 = vmatpush.xpose.msk.msra.mxu3 %vm45_vm0, %v29_v13 }
  0x2e   :  { %697 = vmatpush.xpose.msk.msra.mxu0 %vm45_vm0, %v28_v14  ;;  %712 = vmatpush.xpose.msk.msra.mxu1 %vm45_vm0, %v28_v14 }
  0x2f   :  { %727 = vmatpush.xpose.msk.msra.mxu2 %vm45_vm0, %v28_v14  ;;  %742 = vmatpush.xpose.msk.msra.mxu3 %vm45_vm0, %v28_v14 }
  0x31   :  { %698 = vmatmul.msk.f32.vlgmr.msra.gmra.mxu0 %vm45_vm0, %v43_v6 }
  0x32   :  { %746 = vmatpush.xpose.msk.msrb.mxu0 %vm45_vm0, %v951_v0  ;;  %761 = vmatpush.xpose.msk.msrb.mxu1 %vm45_vm0, %v951_v0 }
  0x33   :  { %776 = vmatpush.xpose.msk.msrb.mxu2 %vm45_vm0, %v951_v0  ;;  %791 = vmatpush.xpose.msk.msrb.mxu3 %vm45_vm0, %v951_v0 }
  0x36   :  { %747 = vmatpush.xpose.msk.msrb.mxu0 %vm45_vm0, %v960_v1  ;;  %762 = vmatpush.xpose.msk.msrb.mxu1 %vm45_vm0, %v960_v1 }
  0x37   :  { %777 = vmatpush.xpose.msk.msrb.mxu2 %vm45_vm0, %v960_v1  ;;  %792 = vmatpush.xpose.msk.msrb.mxu3 %vm45_vm0, %v960_v1 }
  0x3a   :  { %748 = vmatpush.xpose.msk.msrb.mxu0 %vm45_vm0, %v973_v2  ;;  %763 = vmatpush.xpose.msk.msrb.mxu1 %vm45_vm0, %v973_v2 }
  0x3b   :  { %778 = vmatpush.xpose.msk.msrb.mxu2 %vm45_vm0, %v973_v2  ;;  %793 = vmatpush.xpose.msk.msrb.mxu3 %vm45_vm0, %v973_v2 }
  0x3e   :  { %749 = vmatpush.xpose.msk.msrb.mxu0 %vm45_vm0, %v990_v4  ;;  %764 = vmatpush.xpose.msk.msrb.mxu1 %vm45_vm0, %v990_v4 }
  0x3f   :  { %779 = vmatpush.xpose.msk.msrb.mxu2 %vm45_vm0, %v990_v4  ;;  %794 = vmatpush.xpose.msk.msrb.mxu3 %vm45_vm0, %v990_v4 }
  0x42   :  { %750 = vmatpush.xpose.msk.msrb.mxu0 %vm45_vm0, %v1003_v5  ;;  %765 = vmatpush.xpose.msk.msrb.mxu1 %vm45_vm0, %v1003_v5 }
  0x43   :  { %780 = vmatpush.xpose.msk.msrb.mxu2 %vm45_vm0, %v1003_v5  ;;  %795 = vmatpush.xpose.msk.msrb.mxu3 %vm45_vm0, %v1003_v5 }
  0x46   :  { %751 = vmatpush.xpose.msk.msrb.mxu0 %vm45_vm0, %v1020_v8  ;;  %766 = vmatpush.xpose.msk.msrb.mxu1 %vm45_vm0, %v1020_v8 }
  0x47   :  { %781 = vmatpush.xpose.msk.msrb.mxu2 %vm45_vm0, %v1020_v8  ;;  %796 = vmatpush.xpose.msk.msrb.mxu3 %vm45_vm0, %v1020_v8 }
  0x4a   :  { %752 = vmatpush.xpose.msk.msrb.mxu0 %vm45_vm0, %v33_v9  ;;  %767 = vmatpush.xpose.msk.msrb.mxu1 %vm45_vm0, %v33_v9 }
  0x4b   :  { %782 = vmatpush.xpose.msk.msrb.mxu2 %vm45_vm0, %v33_v9  ;;  %797 = vmatpush.xpose.msk.msrb.mxu3 %vm45_vm0, %v33_v9 }
  0x4e   :  { %753 = vmatpush.xpose.msk.msrb.mxu0 %vm45_vm0, %v32_v10  ;;  %768 = vmatpush.xpose.msk.msrb.mxu1 %vm45_vm0, %v32_v10 }
  0x4f   :  { %783 = vmatpush.xpose.msk.msrb.mxu2 %vm45_vm0, %v32_v10  ;;  %798 = vmatpush.xpose.msk.msrb.mxu3 %vm45_vm0, %v32_v10 }
  0x52   :  { %754 = vmatpush.xpose.msk.msrb.mxu0 %vm45_vm0, %v31_v11  ;;  %769 = vmatpush.xpose.msk.msrb.mxu1 %vm45_vm0, %v31_v11 }
  0x53   :  { %784 = vmatpush.xpose.msk.msrb.mxu2 %vm45_vm0, %v31_v11  ;;  %799 = vmatpush.xpose.msk.msrb.mxu3 %vm45_vm0, %v31_v11  ;;  %v715_v11 = vld [vmem:[%s1241_s0 + $0x4] sm:$0x3] }
  0x56   :  { %755 = vmatpush.xpose.msk.msrb.mxu0 %vm45_vm0, %v30_v12  ;;  %770 = vmatpush.xpose.msk.msrb.mxu1 %vm45_vm0, %v30_v12 }
  0x57   :  { %785 = vmatpush.xpose.msk.msrb.mxu2 %vm45_vm0, %v30_v12  ;;  %800 = vmatpush.xpose.msk.msrb.mxu3 %vm45_vm0, %v30_v12 }
  0x5a   :  { %756 = vmatpush.xpose.msk.msrb.mxu0 %vm45_vm0, %v29_v13  ;;  %771 = vmatpush.xpose.msk.msrb.mxu1 %vm45_vm0, %v29_v13 }
  0x5b   :  { %786 = vmatpush.xpose.msk.msrb.mxu2 %vm45_vm0, %v29_v13  ;;  %801 = vmatpush.xpose.msk.msrb.mxu3 %vm45_vm0, %v29_v13 }
  0x5e   :  { %757 = vmatpush.xpose.msk.msrb.mxu0 %vm45_vm0, %v28_v14  ;;  %772 = vmatpush.xpose.msk.msrb.mxu1 %vm45_vm0, %v28_v14 }
  0x5f   :  { %787 = vmatpush.xpose.msk.msrb.mxu2 %vm45_vm0, %v28_v14  ;;  %802 = vmatpush.xpose.msk.msrb.mxu3 %vm45_vm0, %v28_v14 }
  0x67   :  { %v147_v38 = vpop.permute.xlu2 %146 }
  0x7a   :  { %v1150_v15 = vpop.permute.xlu0 %125 }
  0xae   :  { %v102_v16 = vpop.f32.mrf.mxu0 }
  0xaf   :  { %v128_v17 = vadd.f32 %v1150_v15, %v102_v16  ;;  %v105_v19 = vadd.f32 %v102_v16, %v44_v18 }
  0xb1   :  { %130 = vrot.lane.b32.xlu0 %v128_v17, %s913_s9  ;;  %v699_v20 = vmul.f32 -1.442695, %v105_v19 }
  0xb3   :  { %812 = vpow2.f32 %v699_v20 }
  0xb9   :  { %v813_v21 = vpop.eup %812 }
  0xba   :  { %v109_v22 = vadd.f32 1.0, %v813_v21 }
  0xbc   :  { %814 = vrcp.f32 %v109_v22  ;;  %v121_v28 = vand.u32 2147483648, %v109_v22  ;;  %vm115_vm3 = vweird.f32 %v109_v22  ;;  %v119_v29 = vand.u32 2147483647, %v109_v22 }
  0xbe   :  { %v122_v31 = vor.u32 1.1754944e-38, %v121_v28  ;;  %vm120_vm5 = vcmp.eq.f32.partialorder %v119_v29, 8.507059e+37 }
  0xc2   :  { %v815_v23 = vpop.eup %814 }
  0xc3   :  { %v111_v24 = vmul.f32 %v815_v23, %v109_v22  ;;  %vm116_vm2 = vweird.f32 %v815_v23 }
  0xc4   :  { %vm117_vm4 = vmor %vm115_vm3, %vm116_vm2 }
  0xc5   :  { %v112_v25 = vsub.f32 1.0, %v111_v24 }
  0xc7   :  { %v113_v26 = vmul.f32 %v815_v23, %v112_v25 }
  0xc9   :  { %v114_v27 = vadd.f32 %v815_v23, %v113_v26 }
  0xcb   :  { %v118_v30 = vsel %vm117_vm4, %v815_v23, %v114_v27 }
  0xcc   :  { %v123_v32 = vsel %vm120_vm5, %v122_v31, %v118_v30 }
  0xcd   :  { %v140_v39 = vsub.f32 1.0, %v123_v32  ;;  %v149_v41 = vmul.f32 %v147_v38, %v123_v32 }
 0x123   :  { %v131_v33 = vpop.permute.xlu0 %130 }
 0x124   :  { %v133_v34 = vmul.f32 %v131_v33, %v123_v32 }
 0x126   :  { %135 = vrot.lane.b32.xlu1 %v133_v34, %s913_s9 }
 0x198   :  { %v136_v35 = vpop.permute.xlu1 %135 }
 0x199   :  { %v138_v36 = vadd.f32 %v136_v35, %v44_v18 }
 0x19b   :  { %816 = vtanh.f32 %v138_v36 }
 0x1a1   :  { %v817_v37 = vpop.eup %816 }
 0x1a2   :  { %142 = vrot.lane.b32.xlu1 %v817_v37, %s914_s22 }
 0x214   :  { %v143_v40 = vpop.permute.xlu1 %142 }
 0x215   :  { %v145_v42 = vmul.f32 %v143_v40, %v140_v39  ;;  %v730_v40 = vld [vmem:[%s1241_s0 + $0x6] sm:$0x3] }
 0x217   :  { %v150_v43 = vadd.f32 %v149_v41, %v145_v42 }
 0x219   :  { %152 = vrot.lane.b32.xlu2 %v150_v43, %s914_s22 }
 0x273   :  { %v153_v44 = vpop.permute.xlu2 %152 }
 0x274   :  { %156 = vst.msk [vmem:[#allocation3] sm:$0x3] %vm26_vm1, %v153_v44  ;;  %713 = vmatmul.msk.f32.vlgmr.msra.gmra.mxu1 %vm45_vm0, %v153_v44 }
 0x2f1   :  { %v178_v45 = vpop.f32.mrf.mxu1 }
 0x2f2   :  { %v201_v46 = vadd.f32 %v178_v45, %v1150_v15  ;;  %v181_v48 = vadd.f32 %v700_v47, %v178_v45 }
 0x2f4   :  { %203 = vrot.lane.b32.xlu0 %v201_v46, %s913_s9  ;;  %v714_v49 = vmul.f32 -1.442695, %v181_v48 }
 0x2f6   :  { %818 = vpow2.f32 %v714_v49 }
 0x2fc   :  { %v819_v50 = vpop.eup %818 }
 0x2fd   :  { %v185_v51 = vadd.f32 1.0, %v819_v50 }
 0x2ff   :  { %820 = vrcp.f32 %v185_v51  ;;  %v197_v57 = vand.u32 2147483648, %v185_v51  ;;  %vm191_vm7 = vweird.f32 %v185_v51  ;;  %v195_v58 = vand.u32 2147483647, %v185_v51 }
 0x301   :  { %v198_v60 = vor.u32 1.1754944e-38, %v197_v57  ;;  %vm196_vm9 = vcmp.eq.f32.partialorder %v195_v58, 8.507059e+37 }
 0x305   :  { %v821_v52 = vpop.eup %820 }
 0x306   :  { %v187_v53 = vmul.f32 %v821_v52, %v185_v51  ;;  %vm192_vm6 = vweird.f32 %v821_v52 }
 0x307   :  { %vm193_vm8 = vmor %vm191_vm7, %vm192_vm6 }
 0x308   :  { %v188_v54 = vsub.f32 1.0, %v187_v53 }
 0x30a   :  { %v189_v55 = vmul.f32 %v821_v52, %v188_v54 }
 0x30c   :  { %v190_v56 = vadd.f32 %v821_v52, %v189_v55 }
 0x30e   :  { %v194_v59 = vsel %vm193_vm8, %v821_v52, %v190_v56 }
 0x30f   :  { %v199_v62 = vsel %vm196_vm9, %v198_v60, %v194_v59 }
 0x310   :  { %v213_v3 = vsub.f32 1.0, %v199_v62  ;;  %v219_v5 = vmul.f32 %v199_v62, %v150_v43 }
 0x366   :  { %v204_v61 = vpop.permute.xlu0 %203 }
 0x367   :  { %v206_v63 = vmul.f32 %v204_v61, %v199_v62 }
 0x369   :  { %208 = vrot.lane.b32.xlu1 %v206_v63, %s913_s9 }
 0x3db   :  { %v209_v0 = vpop.permute.xlu1 %208 }
 0x3dc   :  { %v211_v1 = vadd.f32 %v700_v47, %v209_v0 }
 0x3de   :  { %822 = vtanh.f32 %v211_v1 }
 0x3e4   :  { %v823_v2 = vpop.eup %822 }
 0x3e5   :  { %215 = vrot.lane.b32.xlu2 %v823_v2, %s914_s22 }
 0x43f   :  { %v216_v4 = vpop.permute.xlu2 %215 }
 0x440   :  { %v218_v6 = vmul.f32 %v216_v4, %v213_v3  ;;  %v745_v4 = vld [vmem:[%s1241_s0 + $0x8] sm:$0x3] }
 0x442   :  { %v220_v7 = vadd.f32 %v219_v5, %v218_v6 }
 0x444   :  { %222 = vrot.lane.b32.xlu0 %v220_v7, %s914_s22 }
 0x4b6   :  { %v223_v8 = vpop.permute.xlu0 %222 }
 0x4b7   :  { %226 = vst.msk [vmem:[#allocation3 + $0x2] sm:$0x3] %vm26_vm1, %v223_v8  ;;  %728 = vmatmul.msk.f32.vlgmr.msra.gmra.mxu2 %vm45_vm0, %v223_v8 }
 0x53a   :  { %v248_v9 = vpop.f32.mrf.mxu2 }
 0x53b   :  { %v271_v10 = vadd.f32 %v248_v9, %v1150_v15  ;;  %v251_v12 = vadd.f32 %v715_v11, %v248_v9 }
 0x53d   :  { %273 = vrot.lane.b32.xlu1 %v271_v10, %s913_s9  ;;  %v729_v13 = vmul.f32 -1.442695, %v251_v12 }
 0x53f   :  { %824 = vpow2.f32 %v729_v13 }
 0x545   :  { %v825_v14 = vpop.eup %824 }
 0x546   :  { %v255_v16 = vadd.f32 1.0, %v825_v14 }
 0x548   :  { %826 = vrcp.f32 %v255_v16  ;;  %v267_v22 = vand.u32 2147483648, %v255_v16  ;;  %vm261_vm11 = vweird.f32 %v255_v16  ;;  %v265_v23 = vand.u32 2147483647, %v255_v16 }
 0x54a   :  { %v268_v25 = vor.u32 1.1754944e-38, %v267_v22  ;;  %vm266_vm13 = vcmp.eq.f32.partialorder %v265_v23, 8.507059e+37 }
 0x54e   :  { %v827_v17 = vpop.eup %826 }
 0x54f   :  { %v257_v18 = vmul.f32 %v827_v17, %v255_v16  ;;  %vm262_vm10 = vweird.f32 %v827_v17 }
 0x550   :  { %vm263_vm12 = vmor %vm261_vm11, %vm262_vm10 }
 0x551   :  { %v258_v19 = vsub.f32 1.0, %v257_v18 }
 0x553   :  { %v259_v20 = vmul.f32 %v827_v17, %v258_v19 }
 0x555   :  { %v260_v21 = vadd.f32 %v827_v17, %v259_v20 }
 0x557   :  { %v264_v24 = vsel %vm263_vm12, %v827_v17, %v260_v21 }
 0x558   :  { %v269_v27 = vsel %vm266_vm13, %v268_v25, %v264_v24 }
 0x559   :  { %v283_v32 = vsub.f32 1.0, %v269_v27  ;;  %v289_v34 = vmul.f32 %v269_v27, %v220_v7 }
 0x5af   :  { %v274_v26 = vpop.permute.xlu1 %273 }
 0x5b0   :  { %v276_v28 = vmul.f32 %v274_v26, %v269_v27 }
 0x5b2   :  { %278 = vrot.lane.b32.xlu2 %v276_v28, %s913_s9 }
 0x60c   :  { %v279_v29 = vpop.permute.xlu2 %278 }
 0x60d   :  { %v281_v30 = vadd.f32 %v715_v11, %v279_v29 }
 0x60f   :  { %828 = vtanh.f32 %v281_v30 }
 0x615   :  { %v829_v31 = vpop.eup %828 }
 0x616   :  { %285 = vrot.lane.b32.xlu0 %v829_v31, %s914_s22 }
 0x688   :  { %v286_v33 = vpop.permute.xlu0 %285 }
 0x689   :  { %v288_v35 = vmul.f32 %v286_v33, %v283_v32  ;;  %v760_v33 = vld [vmem:[%s1241_s0 + $0xa] sm:$0x3] }
 0x68b   :  { %v290_v36 = vadd.f32 %v289_v34, %v288_v35 }
 0x68d   :  { %292 = vrot.lane.b32.xlu1 %v290_v36, %s914_s22 }
 0x6ff   :  { %v293_v37 = vpop.permute.xlu1 %292 }
 0x700   :  { %296 = vst.msk [vmem:[#allocation3 + $0x4] sm:$0x3] %vm26_vm1, %v293_v37  ;;  %743 = vmatmul.msk.f32.vlgmr.msra.gmra.mxu3 %vm45_vm0, %v293_v37 }
 0x783   :  { %v318_v38 = vpop.f32.mrf.mxu3 }
 0x784   :  { %v341_v39 = vadd.f32 %v318_v38, %v1150_v15  ;;  %v321_v41 = vadd.f32 %v730_v40, %v318_v38 }
 0x786   :  { %343 = vrot.lane.b32.xlu2 %v341_v39, %s913_s9  ;;  %v744_v42 = vmul.f32 -1.442695, %v321_v41 }
 0x788   :  { %830 = vpow2.f32 %v744_v42 }
 0x78e   :  { %v831_v43 = vpop.eup %830 }
 0x78f   :  { %v325_v44 = vadd.f32 1.0, %v831_v43 }
 0x791   :  { %832 = vrcp.f32 %v325_v44  ;;  %v337_v50 = vand.u32 2147483648, %v325_v44  ;;  %vm331_vm15 = vweird.f32 %v325_v44  ;;  %v335_v51 = vand.u32 2147483647, %v325_v44 }
 0x793   :  { %v338_v53 = vor.u32 1.1754944e-38, %v337_v50  ;;  %vm336_vm3 = vcmp.eq.f32.partialorder %v335_v51, 8.507059e+37 }
 0x797   :  { %v833_v45 = vpop.eup %832 }
 0x798   :  { %v327_v46 = vmul.f32 %v833_v45, %v325_v44  ;;  %vm332_vm14 = vweird.f32 %v833_v45 }
 0x799   :  { %vm333_vm2 = vmor %vm331_vm15, %vm332_vm14 }
 0x79a   :  { %v328_v47 = vsub.f32 1.0, %v327_v46 }
 0x79c   :  { %v329_v48 = vmul.f32 %v833_v45, %v328_v47 }
 0x79e   :  { %v330_v49 = vadd.f32 %v833_v45, %v329_v48 }
 0x7a0   :  { %v334_v52 = vsel %vm333_vm2, %v833_v45, %v330_v49 }
 0x7a1   :  { %v339_v55 = vsel %vm336_vm3, %v338_v53, %v334_v52 }
 0x7a2   :  { %v353_v60 = vsub.f32 1.0, %v339_v55  ;;  %v359_v62 = vmul.f32 %v339_v55, %v290_v36 }
 0x7e0   :  { %v344_v54 = vpop.permute.xlu2 %343 }
 0x7e1   :  { %v346_v56 = vmul.f32 %v344_v54, %v339_v55 }
 0x7e3   :  { %348 = vrot.lane.b32.xlu0 %v346_v56, %s913_s9 }
 0x855   :  { %v349_v57 = vpop.permute.xlu0 %348 }
 0x856   :  { %v351_v58 = vadd.f32 %v730_v40, %v349_v57 }
 0x858   :  { %834 = vtanh.f32 %v351_v58 }
 0x85e   :  { %v835_v59 = vpop.eup %834 }
 0x85f   :  { %355 = vrot.lane.b32.xlu1 %v835_v59, %s914_s22 }
 0x8d1   :  { %v356_v61 = vpop.permute.xlu1 %355 }
 0x8d2   :  { %v358_v63 = vmul.f32 %v356_v61, %v353_v60  ;;  %v775_v61 = vld [vmem:[%s1241_s0 + $0xc] sm:$0x3] }
 0x8d4   :  { %v360_v0 = vadd.f32 %v359_v62, %v358_v63 }
 0x8d6   :  { %362 = vrot.lane.b32.xlu2 %v360_v0, %s914_s22 }
 0x930   :  { %v363_v1 = vpop.permute.xlu2 %362 }
 0x931   :  { %366 = vst.msk [vmem:[#allocation3 + $0x6] sm:$0x3] %vm26_vm1, %v363_v1  ;;  %758 = vmatmul.msk.f32.vlgmr.msrb.gmra.mxu0 %vm45_vm0, %v363_v1 }
 0x9ae   :  { %v388_v2 = vpop.f32.mrf.mxu0 }
 0x9af   :  { %v411_v3 = vadd.f32 %v388_v2, %v1150_v15  ;;  %v391_v5 = vadd.f32 %v745_v4, %v388_v2 }
 0x9b1   :  { %413 = vrot.lane.b32.xlu0 %v411_v3, %s913_s9  ;;  %v759_v6 = vmul.f32 -1.442695, %v391_v5 }
 0x9b3   :  { %836 = vpow2.f32 %v759_v6 }
 0x9b9   :  { %v837_v7 = vpop.eup %836 }
 0x9ba   :  { %v395_v8 = vadd.f32 1.0, %v837_v7 }
 0x9bc   :  { %838 = vrcp.f32 %v395_v8  ;;  %v407_v14 = vand.u32 2147483648, %v395_v8  ;;  %vm401_vm5 = vweird.f32 %v395_v8  ;;  %v405_v16 = vand.u32 2147483647, %v395_v8 }
 0x9be   :  { %v408_v18 = vor.u32 1.1754944e-38, %v407_v14  ;;  %vm406_vm7 = vcmp.eq.f32.partialorder %v405_v16, 8.507059e+37 }
 0x9c2   :  { %v839_v9 = vpop.eup %838 }
 0x9c3   :  { %v397_v10 = vmul.f32 %v839_v9, %v395_v8  ;;  %vm402_vm4 = vweird.f32 %v839_v9 }
 0x9c4   :  { %vm403_vm6 = vmor %vm401_vm5, %vm402_vm4 }
 0x9c5   :  { %v398_v11 = vsub.f32 1.0, %v397_v10 }
 0x9c7   :  { %v399_v12 = vmul.f32 %v839_v9, %v398_v11 }
 0x9c9   :  { %v400_v13 = vadd.f32 %v839_v9, %v399_v12 }
 0x9cb   :  { %v404_v17 = vsel %vm403_vm6, %v839_v9, %v400_v13 }
 0x9cc   :  { %v409_v20 = vsel %vm406_vm7, %v408_v18, %v404_v17 }
 0x9cd   :  { %v423_v25 = vsub.f32 1.0, %v409_v20  ;;  %v429_v27 = vmul.f32 %v409_v20, %v360_v0 }
 0xa23   :  { %v414_v19 = vpop.permute.xlu0 %413 }
 0xa24   :  { %v416_v21 = vmul.f32 %v414_v19, %v409_v20 }
 0xa26   :  { %418 = vrot.lane.b32.xlu1 %v416_v21, %s913_s9 }
 0xa98   :  { %v419_v22 = vpop.permute.xlu1 %418 }
 0xa99   :  { %v421_v23 = vadd.f32 %v745_v4, %v419_v22 }
 0xa9b   :  { %840 = vtanh.f32 %v421_v23 }
 0xaa1   :  { %v841_v24 = vpop.eup %840 }
 0xaa2   :  { %425 = vrot.lane.b32.xlu2 %v841_v24, %s914_s22 }
 0xafc   :  { %v426_v26 = vpop.permute.xlu2 %425 }
 0xafd   :  { %v428_v28 = vmul.f32 %v426_v26, %v423_v25  ;;  %v790_v26 = vld [vmem:[%s1241_s0 + $0xe] sm:$0x3]  ;;  %s915_s0 = smov [#allocation3]  }
 0xafe   :  { %s656_s12 = sshll.u32 %s915_s0, 4  ;;  %s657_s12 = int_to_ptr.vmem [resolvable:$true] %s656_s12 }
 0xaff   :  { %v430_v29 = vadd.f32 %v429_v27, %v428_v28 }
 0xb01   :  { %432 = vrot.lane.b32.xlu0 %v430_v29, %s914_s22 }
 0xb73   :  { %v433_v30 = vpop.permute.xlu0 %432 }
 0xb74   :  { %436 = vst.msk [vmem:[#allocation3 + $0x8] sm:$0x3] %vm26_vm1, %v433_v30  ;;  %773 = vmatmul.msk.f32.vlgmr.msrb.gmra.mxu1 %vm45_vm0, %v433_v30 }
 0xbf1   :  { %v458_v31 = vpop.f32.mrf.mxu1 }
 0xbf2   :  { %v481_v32 = vadd.f32 %v458_v31, %v1150_v15  ;;  %v461_v34 = vadd.f32 %v760_v33, %v458_v31 }
 0xbf4   :  { %483 = vrot.lane.b32.xlu1 %v481_v32, %s913_s9  ;;  %v774_v35 = vmul.f32 -1.442695, %v461_v34 }
 0xbf6   :  { %842 = vpow2.f32 %v774_v35 }
 0xbfc   :  { %v843_v36 = vpop.eup %842 }
 0xbfd   :  { %v465_v37 = vadd.f32 1.0, %v843_v36 }
 0xbff   :  { %844 = vrcp.f32 %v465_v37  ;;  %v477_v43 = vand.u32 2147483648, %v465_v37  ;;  %vm471_vm9 = vweird.f32 %v465_v37  ;;  %v475_v44 = vand.u32 2147483647, %v465_v37 }
 0xc01   :  { %v478_v46 = vor.u32 1.1754944e-38, %v477_v43  ;;  %vm476_vm11 = vcmp.eq.f32.partialorder %v475_v44, 8.507059e+37 }
 0xc05   :  { %v845_v38 = vpop.eup %844 }
 0xc06   :  { %v467_v39 = vmul.f32 %v845_v38, %v465_v37  ;;  %vm472_vm8 = vweird.f32 %v845_v38 }
 0xc07   :  { %vm473_vm10 = vmor %vm471_vm9, %vm472_vm8 }
 0xc08   :  { %v468_v40 = vsub.f32 1.0, %v467_v39 }
 0xc0a   :  { %v469_v41 = vmul.f32 %v845_v38, %v468_v40 }
 0xc0c   :  { %v470_v42 = vadd.f32 %v845_v38, %v469_v41 }
 0xc0e   :  { %v474_v45 = vsel %vm473_vm10, %v845_v38, %v470_v42 }
 0xc0f   :  { %v479_v48 = vsel %vm476_vm11, %v478_v46, %v474_v45 }
 0xc10   :  { %v493_v53 = vsub.f32 1.0, %v479_v48  ;;  %v499_v55 = vmul.f32 %v479_v48, %v430_v29 }
 0xc66   :  { %v484_v47 = vpop.permute.xlu1 %483 }
 0xc67   :  { %v486_v49 = vmul.f32 %v484_v47, %v479_v48 }
 0xc69   :  { %488 = vrot.lane.b32.xlu2 %v486_v49, %s913_s9 }
 0xcc3   :  { %v489_v50 = vpop.permute.xlu2 %488 }
 0xcc4   :  { %v491_v51 = vadd.f32 %v760_v33, %v489_v50 }
 0xcc6   :  { %846 = vtanh.f32 %v491_v51 }
 0xccc   :  { %v847_v52 = vpop.eup %846 }
 0xccd   :  { %495 = vrot.lane.b32.xlu0 %v847_v52, %s914_s22 }
 0xd3f   :  { %v496_v54 = vpop.permute.xlu0 %495 }
 0xd40   :  { %v498_v56 = vmul.f32 %v496_v54, %v493_v53 }
 0xd42   :  { %v500_v57 = vadd.f32 %v499_v55, %v498_v56 }
 0xd44   :  { %502 = vrot.lane.b32.xlu1 %v500_v57, %s914_s22 }
 0xdb6   :  { %v503_v58 = vpop.permute.xlu1 %502 }
 0xdb7   :  { %506 = vst.msk [vmem:[#allocation3 + $0xa] sm:$0x3] %vm26_vm1, %v503_v58  ;;  %788 = vmatmul.msk.f32.vlgmr.msrb.gmra.mxu2 %vm45_vm0, %v503_v58 }
 0xe3a   :  { %v528_v59 = vpop.f32.mrf.mxu2 }
 0xe3b   :  { %v551_v60 = vadd.f32 %v528_v59, %v1150_v15  ;;  %v531_v62 = vadd.f32 %v775_v61, %v528_v59 }
 0xe3d   :  { %553 = vrot.lane.b32.xlu2 %v551_v60, %s913_s9  ;;  %v789_v63 = vmul.f32 -1.442695, %v531_v62 }
 0xe3f   :  { %848 = vpow2.f32 %v789_v63 }
 0xe45   :  { %v849_v0 = vpop.eup %848 }
 0xe46   :  { %v535_v1 = vadd.f32 1.0, %v849_v0 }
 0xe48   :  { %850 = vrcp.f32 %v535_v1  ;;  %v547_v7 = vand.u32 2147483648, %v535_v1  ;;  %vm541_vm13 = vweird.f32 %v535_v1  ;;  %v545_v8 = vand.u32 2147483647, %v535_v1 }
 0xe4a   :  { %v548_v10 = vor.u32 1.1754944e-38, %v547_v7  ;;  %vm546_vm15 = vcmp.eq.f32.partialorder %v545_v8, 8.507059e+37 }
 0xe4e   :  { %v851_v2 = vpop.eup %850 }
 0xe4f   :  { %v537_v3 = vmul.f32 %v851_v2, %v535_v1  ;;  %vm542_vm12 = vweird.f32 %v851_v2 }
 0xe50   :  { %vm543_vm14 = vmor %vm541_vm13, %vm542_vm12 }
 0xe51   :  { %v538_v4 = vsub.f32 1.0, %v537_v3 }
 0xe53   :  { %v539_v5 = vmul.f32 %v851_v2, %v538_v4 }
 0xe55   :  { %v540_v6 = vadd.f32 %v851_v2, %v539_v5 }
 0xe57   :  { %v544_v9 = vsel %vm543_vm14, %v851_v2, %v540_v6 }
 0xe58   :  { %v549_v12 = vsel %vm546_vm15, %v548_v10, %v544_v9 }
 0xe59   :  { %v563_v18 = vsub.f32 1.0, %v549_v12  ;;  %v569_v20 = vmul.f32 %v549_v12, %v500_v57 }
 0xe97   :  { %v554_v11 = vpop.permute.xlu2 %553 }
 0xe98   :  { %v556_v13 = vmul.f32 %v554_v11, %v549_v12 }
 0xe9a   :  { %558 = vrot.lane.b32.xlu0 %v556_v13, %s913_s9 }
 0xf0c   :  { %v559_v14 = vpop.permute.xlu0 %558 }
 0xf0d   :  { %v561_v16 = vadd.f32 %v775_v61, %v559_v14 }
 0xf0f   :  { %852 = vtanh.f32 %v561_v16 }
 0xf15   :  { %v853_v17 = vpop.eup %852 }
 0xf16   :  { %565 = vrot.lane.b32.xlu1 %v853_v17, %s914_s22 }
 0xf88   :  { %v566_v19 = vpop.permute.xlu1 %565 }
 0xf89   :  { %v568_v21 = vmul.f32 %v566_v19, %v563_v18 }
 0xf8b   :  { %v570_v22 = vadd.f32 %v569_v20, %v568_v21 }
 0xf8d   :  { %572 = vrot.lane.b32.xlu2 %v570_v22, %s914_s22 }
 0xfe7   :  { %v573_v23 = vpop.permute.xlu2 %572 }
 0xfe8   :  { %576 = vst.msk [vmem:[#allocation3 + $0xc] sm:$0x3] %vm26_vm1, %v573_v23  ;;  %803 = vmatmul.msk.f32.vlgmr.msrb.gmra.mxu3 %vm45_vm0, %v573_v23 }
0x106b   :  { %v598_v24 = vpop.f32.mrf.mxu3 }
0x106c   :  { %v621_v25 = vadd.f32 %v598_v24, %v1150_v15  ;;  %v601_v27 = vadd.f32 %v790_v26, %v598_v24 }
0x106e   :  { %623 = vrot.lane.b32.xlu0 %v621_v25, %s913_s9  ;;  %v804_v28 = vmul.f32 -1.442695, %v601_v27 }
0x1070   :  { %854 = vpow2.f32 %v804_v28 }
0x1076   :  { %v855_v29 = vpop.eup %854 }
0x1077   :  { %v605_v30 = vadd.f32 1.0, %v855_v29 }
0x1079   :  { %856 = vrcp.f32 %v605_v30  ;;  %v617_v36 = vand.u32 2147483648, %v605_v30  ;;  %vm611_vm2 = vweird.f32 %v605_v30  ;;  %v615_v15 = vand.u32 2147483647, %v605_v30 }
0x107b   :  { %v618_v38 = vor.u32 1.1754944e-38, %v617_v36  ;;  %vm616_vm4 = vcmp.eq.f32.partialorder %v615_v15, 8.507059e+37 }
0x107f   :  { %v857_v31 = vpop.eup %856 }
0x1080   :  { %v607_v32 = vmul.f32 %v857_v31, %v605_v30  ;;  %vm612_vm0 = vweird.f32 %v857_v31 }
0x1081   :  { %vm613_vm3 = vmor %vm611_vm2, %vm612_vm0 }
0x1082   :  { %v608_v33 = vsub.f32 1.0, %v607_v32 }
0x1084   :  { %v609_v34 = vmul.f32 %v857_v31, %v608_v33 }
0x1086   :  { %v610_v35 = vadd.f32 %v857_v31, %v609_v34 }
0x1088   :  { %v614_v37 = vsel %vm613_vm3, %v857_v31, %v610_v35 }
0x1089   :  { %v619_v40 = vsel %vm616_vm4, %v618_v38, %v614_v37 }
0x108a   :  { %v633_v45 = vsub.f32 1.0, %v619_v40  ;;  %v639_v47 = vmul.f32 %v619_v40, %v570_v22 }
0x10e0   :  { %v624_v39 = vpop.permute.xlu0 %623 }
0x10e1   :  { %v626_v41 = vmul.f32 %v624_v39, %v619_v40 }
0x10e3   :  { %628 = vrot.lane.b32.xlu1 %v626_v41, %s913_s9  ;;  %s916_s9 = smov [#allocation5]  }
0x10e4   :  { %s670_s16 = sshll.u32 %s916_s9, 4  ;;  %s671_s16 = int_to_ptr.vmem [resolvable:$true] %s670_s16 }
0x1155   :  { %v629_v42 = vpop.permute.xlu1 %628 }
0x1156   :  { %v631_v43 = vadd.f32 %v790_v26, %v629_v42 }
0x1158   :  { %858 = vtanh.f32 %v631_v43 }
0x115e   :  { %v859_v44 = vpop.eup %858 }
0x115f   :  { %635 = vrot.lane.b32.xlu2 %v859_v44, %s914_s22 }
0x11b9   :  { %v636_v46 = vpop.permute.xlu2 %635 }
0x11ba   :  { %v638_v48 = vmul.f32 %v636_v46, %v633_v45 }
0x11bc   :  { %v640_v49 = vadd.f32 %v639_v47, %v638_v48 }
0x11be   :  { %642 = vrot.lane.b32.xlu0 %v640_v49, %s914_s22 }
0x1230   :  { %v643_v50 = vpop.permute.xlu0 %642 }
0x1231   :  { %646 = vst.msk [vmem:[#allocation3 + $0xe] sm:$0x3] %vm26_vm1, %v643_v50 }
0x1232   :  { %647 = vst.msk [vmem:[#allocation2] sm:$0x3] %vm26_vm1, %v643_v50  ;;  %664 = dma.vmem_to_hbm [thread:$0]  %s657_s12, 256, %s659_s15, [#allocation4], %s912_s6, %s912_s6, %s917_s20  }
0x1233   :  { %651 = vst.msk [vmem:[#allocation5] sm:$0x3] %vm26_vm1, %v643_v50 }
0x1234   :  { %675 = dma.vmem_to_hbm [thread:$0]  %s671_s16, 32, %s673_s19, [#allocation6]  }
0x1235   :  { %908 = dma.done.wait [#allocation4], 256  }
0x1236   :  { %909 = vsyncadd [#allocation4], 4294967040 }
0x1237   :  { %910 = dma.done.wait [#allocation6], 32  }
0x1238   :  { %911 = vsyncadd [#allocation6], 4294967264 }
0x1239   :  { %684 = vsyncpa [#allocation4], 1 }
0x123a   :  { %685 = vsyncpa [#allocation6], 1 }

</bundles_post_ra>
